<compile_context>
chip_gen: v5e
topology: v5e:2x2
jax: 0.10.0
libtpu: 0.0.40
codegen_flags: <defaults>
</compile_context>

<pallas_src>
import jax
import jax.numpy as jnp
from jax.experimental import pallas as pl
from jax.experimental.pallas import tpu as pltpu


def _round_up(x, m):
    return (x + m - 1) // m * m


def _rpb_kernel(table_ref, idx_ref, o_ref):
    # table_ref: (H, D_pad)     bf16  transposed bias table (constant block, VMEM-resident)
    # idx_ref:   (1, TILE_N)    int32 flattened relative_position_index tile
    # o_ref:     (H, TILE_N)    f32   permuted bias tile (heads x flattened token pairs)
    d_pad = table_ref.shape[1]
    tile_n = idx_ref.shape[1]
    # One-hot selection matrix: onehot[d, j] = (index[j] == d). Rows d >= D are
    # never selected (index < D), so table padding contributes exactly zero.
    # bf16 one-hot: 0/1 exact, half the VMEM/vst traffic of f32.
    d_iota = jax.lax.broadcasted_iota(jnp.int32, (d_pad, tile_n), 0)
    onehot = (idx_ref[...] == d_iota).astype(jnp.bfloat16)
    # MXU gather: (H, D_pad) @ (D_pad, TILE_N) -> (H, TILE_N), f32 accumulate.
    # Exactly one nonzero per one-hot column => exact gather of bf16 table values.
    o_ref[...] = jnp.dot(table_ref[...], onehot,
                         preferred_element_type=jnp.float32).astype(o_ref.dtype)


def make_relative_position_index(window_size, with_cls_token=True):
    """Static (num_tokens, num_tokens) int32 index, mirroring the PyTorch __init__."""
    Wh, Ww = window_size
    coords_h = jnp.arange(Wh)
    coords_w = jnp.arange(Ww)
    coords = jnp.stack(jnp.meshgrid(coords_h, coords_w, indexing="ij"))   # (2, Wh, Ww)
    coords_flatten = coords.reshape(2, -1)                                 # (2, Wh*Ww)
    rel = coords_flatten[:, :, None] - coords_flatten[:, None, :]          # (2, N, N)
    rel = jnp.transpose(rel, (1, 2, 0))                                    # (N, N, 2)
    rel = rel.at[:, :, 0].add(Wh - 1)
    rel = rel.at[:, :, 1].add(Ww - 1)
    rel = rel.at[:, :, 0].multiply(2 * Ww - 1)
    if with_cls_token:
        num_relative_distance = (2 * Wh - 1) * (2 * Ww - 1) + 3
        N = Wh * Ww
        rpi = jnp.zeros((N + 1, N + 1), dtype=jnp.int32)
        rpi = rpi.at[1:, 1:].set(rel.sum(-1).astype(jnp.int32))
        rpi = rpi.at[0, :].set(num_relative_distance - 3)
        rpi = rpi.at[:, 0].set(num_relative_distance - 2)
        rpi = rpi.at[0, 0].set(num_relative_distance - 1)
    else:
        rpi = rel.sum(-1).astype(jnp.int32)
    return rpi


def init_relative_position_bias(window_size, num_heads, with_cls_token=True,
                                max_tile_n=2048):
    """Init-time static setup (PyTorch __init__ equivalent).

    Precomputes the relative_position_index, its flattened/padded (1, tt_pad)
    form, and all tiling constants, so the per-call wrapper does no index glue.
    """
    assert max_tile_n % 128 == 0, "output tile must be lane-dense (multiple of 128)"
    Wh, Ww = window_size
    D = (2 * Wh - 1) * (2 * Ww - 1) + (3 if with_cls_token else 0)
    T = Wh * Ww + (1 if with_cls_token else 0)
    TT = T * T
    # Lane-dense tile, capped so the single "parallel" grid axis keeps >= 2
    # steps whenever the problem allows it (keeps both v7x TensorCores busy).
    tile_n = min(max_tile_n, max(128, _round_up((TT + 1) // 2, 128)))
    tt_pad = _round_up(TT, tile_n)
    d_pad = _round_up(D, 128)

    rpi = make_relative_position_index(window_size, with_cls_token)           # (T, T) int32
    idx_flat = jnp.zeros((1, tt_pad), jnp.int32).at[0, :TT].set(rpi.reshape(-1))

    return dict(num_heads=num_heads, num_relative_distance=D, num_tokens=T,
                tt=TT, tt_pad=tt_pad, d_pad=d_pad, tile_n=tile_n,
                relative_position_index=rpi, idx_flat=idx_flat)


def prepare_table(table, state):
    """Transpose + pad the (D, H) parameter to a (H, d_pad) bf16 MXU operand.

    Do this once per parameter update (or once at load time for inference),
    not per forward call.
    """
    D, H = table.shape
    assert D == state["num_relative_distance"] and H == state["num_heads"]
    table_t = jnp.zeros((H, state["d_pad"]), jnp.bfloat16)
    table_t = table_t.at[:, :D].set(table.T.astype(jnp.bfloat16))
    return table_t


def relative_position_bias(table_t, state):
    """table_t: (H, d_pad) bf16 prepared table (see prepare_table).
    Returns (num_heads, T, T) float32, matching the PyTorch forward()."""
    H = state["num_heads"]
    T = state["num_tokens"]
    TT = state["tt"]
    tt_pad = state["tt_pad"]
    d_pad = state["d_pad"]
    tile_n = state["tile_n"]
    idx_flat = state["idx_flat"]

    grid = (tt_pad // tile_n,)

    cost = pl.CostEstimate(
        flops=2 * H * d_pad * tt_pad,
        transcendentals=0,
        bytes_accessed=table_t.size * 2 + idx_flat.size * 4 + H * tt_pad * 4,
    )

    out = pl.pallas_call(
        _rpb_kernel,
        out_shape=jax.ShapeDtypeStruct((H, tt_pad), jnp.float32),
        grid_spec=pltpu.PrefetchScalarGridSpec(
            num_scalar_prefetch=0,
            grid=grid,
            in_specs=[
                # Table stays at a constant block index -> resident in VMEM.
                # First block dim == full array dim (H), so no 8-divisibility
                # padding needed.
                pl.BlockSpec((H, d_pad), lambda i: (0, 0)),
                # Index tile marches along the flattened token-pair axis.
                pl.BlockSpec((1, tile_n), lambda i: (0, i)),
            ],
            out_specs=pl.BlockSpec((H, tile_n), lambda i: (0, i)),
        ),
        compiler_params=pltpu.CompilerParams(
            dimension_semantics=("parallel",)),
        cost_estimate=cost,
    )(table_t, idx_flat)

    return out[:, :TT].reshape(H, T, T)


if __name__ == "__main__":
    # Small shapes consistent with the module: 4x4 window + cls token, 8 heads.
    window_size = (4, 4)
    num_heads = 8
    with_cls_token = True

    state = init_relative_position_bias(window_size, num_heads, with_cls_token)
    num_relative_distance = state["num_relative_distance"]
    num_tokens = state["num_tokens"]

    # Deterministic synthetic parameters (PyTorch inits the table to zeros,
    # which would make the gather trivially untestable).
    key = jax.random.PRNGKey(0)
    table = jax.random.normal(
        key, (num_relative_distance, num_heads), dtype=jnp.float32) * 0.02

    table_t = prepare_table(table, state)          # once per param update
    out = relative_position_bias(table_t, state)
    out = jax.block_until_ready(out)

    rpi = state["relative_position_index"]

    # Reference 1: exact gather of the bf16-rounded table (what the kernel computes).
    table_bf16 = table.astype(jnp.bfloat16).astype(jnp.float32)
    ref_exact = jnp.transpose(
        table_bf16[rpi.reshape(-1)].reshape(num_tokens, num_tokens, num_heads), (2, 0, 1))
    # Reference 2: original f32 gather (PyTorch forward); bf16 rounding tolerance.
    ref_f32 = jnp.transpose(
        table[rpi.reshape(-1)].reshape(num_tokens, num_tokens, num_heads), (2, 0, 1))

    assert out.shape == (num_heads, num_tokens, num_tokens)
    assert jnp.allclose(out, ref_exact, atol=1e-6, rtol=0.0)
    assert jnp.allclose(out, ref_f32, atol=2e-3, rtol=0.0)

    print("KERNEL_OK")
</pallas_src>

<mosaic_0001>
module attributes {stable_mosaic.version = 11 : i64} {
  func.func @_rpb_kernel(%arg0: i32, %arg1: memref<8x128xbf16, #tpu.memory_space<vmem>>, %arg2: memref<1x256xi32, #tpu.memory_space<vmem>>, %arg3: memref<8x256xf32, #tpu.memory_space<vmem>>) attributes {dimension_semantics = [#tpu.dimension_semantics<parallel>], iteration_bounds = array<i64: 2>, scalar_prefetch = 0 : i64, scratch_operands = 0 : i64, tpu.core_type = #tpu.core_type<tc>, window_params = [{pipeline_mode = #tpu.pipeline_mode<synchronous>, transform_indices = @transform_0, window_bounds = array<i64: 8, 128>}, {transform_indices = @transform_1, window_bounds = array<i64: 1, 256>}, {transform_indices = @transform_2, window_bounds = array<i64: 8, 256>}]} {
    %0 = tpu.iota {dimensions = array<i32: 0>} : vector<128x256xi32>
    %c0 = arith.constant 0 : index
    %c0_0 = arith.constant 0 : index
    %1 = vector.load %arg2[%c0, %c0_0] : memref<1x256xi32, #tpu.memory_space<vmem>>, vector<1x256xi32>
    %2 = vector.broadcast %1 : vector<1x256xi32> to vector<128x256xi32>
    %3 = arith.cmpi eq, %2, %0 : vector<128x256xi32>
    %4 = arith.extui %3 : vector<128x256xi1> to vector<128x256xi32>
    %5 = arith.sitofp %4 : vector<128x256xi32> to vector<128x256xf32>
    %6 = arith.truncf %5 : vector<128x256xf32> to vector<128x256xbf16>
    %c0_1 = arith.constant 0 : index
    %c0_2 = arith.constant 0 : index
    %7 = vector.load %arg1[%c0_1, %c0_2] : memref<8x128xbf16, #tpu.memory_space<vmem>>, vector<8x128xbf16>
    %cst = arith.constant dense<0.000000e+00> : vector<8x256xf32>
    %8 = tpu.matmul %7, %6, %cst {dimension_numbers = #tpu.dot_dimension_numbers<[1], [0], [0], [1], [0, 0, 1, 1], [], []>} : vector<8x128xbf16>, vector<128x256xbf16>, vector<8x256xf32> -> vector<8x256xf32>
    %c0_3 = arith.constant 0 : index
    %c0_4 = arith.constant 0 : index
    %9 = vector.load %arg3[%c0_3, %c0_4] : memref<8x256xf32, #tpu.memory_space<vmem>>, vector<8x256xf32>
    tpu.vector_store %arg3[%c0_3, %c0_4], %8 {strides = array<i32>} : memref<8x256xf32, #tpu.memory_space<vmem>>, vector<8x256xf32>,
    return
  }
  func.func @transform_0(%arg0: i32) -> (i32, i32) {
    %c0_i32 = arith.constant 0 : i32
    %c0_i32_0 = arith.constant 0 : i32
    %c0_i32_1 = arith.constant 0 : i32
    return %c0_i32, %c0_i32_0 : i32, i32
  }
  func.func @transform_1(%arg0: i32) -> (i32, i32) {
    %c0_i32 = arith.constant 0 : i32
    %c0_i32_0 = arith.constant 0 : i32
    return %c0_i32, %arg0 : i32, i32
  }
  func.func @transform_2(%arg0: i32) -> (i32, i32) {
    %c0_i32 = arith.constant 0 : i32
    %c0_i32_0 = arith.constant 0 : i32
    return %c0_i32, %arg0 : i32, i32
  }
}

</mosaic_0001>

<bundles_post_ra>
// kernel: tpu_custom_call.1
= control target key start
LH: loop header
LB: loop body
LE: loop exit
PB: predicated region body
PF: predicated region fallthrough
CT: control target
= control target key end

     0   :  { %7 = vsyncpa [#allocation3], 0  ;;  %s935_s0 = inlined_call_operand.hbm [shape: bf16[8,128], index: 0, kind: input, shape index: {}]   ;;  %s936_s1 = inlined_call_operand.hbm [shape: s32[1,512], index: 1, kind: input, shape index: {}]   ;;  %s937_s2 = inlined_call_operand.hbm [shape: f32[8,512], index: 2, kind: output, shape index: {}]  }
   0x1   :  { %8 = vsyncpa [#allocation6], 0 }
   0x2   :  { %10 = vsyncpa [#allocation6 + $0x1], 0 }
   0x3   :  { %11 = vsyncpa [#allocation4], 0 }
   0x4   :  { %13 = vsyncpa [#allocation4 + $0x1], 0  ;;  %s725_s9 = smov 0   ;;  %s727_s10 = smov 0  }
   0x5   :  { %s729_s11 = smov 0   ;;  %s731_s12 = smov 0  }
   0x6 LB: > { %s746_s13 = sadd.s32 4294967295, %s706_s12   ;;  %s438_s14 = sadd.s32 4294967294, %s706_s12   ;;  %s706_s12 = sphi %s731_s12, %s947_s12   ;;  %s702_s11 = sphi %s729_s11, %s946_s11   ;;  %s698_s10 = sphi %s727_s10, %s945_s10   ;;  %s694_s9 = sphi %s725_s9, %s944_s9  }
   0x7   : > { %p60_p0 = scmp.ne.s32.totalorder %s698_s10, %s694_s9  ;;  %p61_p1 = scmp.eq.s32.totalorder %s746_s13, 0 }
   0x8   : > { %p84_p2 = scmp.eq.s32.totalorder %s746_s13, 1  ;;  %p90_p3 = scmp.eq.s32.totalorder %s438_s14, 1 }
   0x9   : > { %p755_p4 = por %p61_p1, %p60_p0  ;;  %p439_p5 = scmp.ge.s32.totalorder %s706_s12, 1 }
   0xa   : > { %p760_p6 = por %p90_p3, %p60_p0  ;;  %p97_p7 = scmp.lt.s32.totalorder %s706_s12, 3 }
   0xb   : > { %s109_s19 = sshll.u32 %s935_s0, 4  ;;  %s708_s21 = smov [#allocation2]   ;;  %s110_s19 = int_to_ptr.hbm [resolvable:$true] %s109_s19 }
   0xc   : > { %p768_p8 = pnand %p439_p5, %p97_p7  ;;  %s111_s22 = sshll.u32 %s708_s21, 4  ;;  %s112_s22 = int_to_ptr.vmem [resolvable:$true] %s111_s22 }
   0xd   : > { %s778_s23 = sadd.s32 1, %s706_s12   ;;  %s47_s24 = sadd.s32 1, %s702_s11 }
   0xe   : > { %p526_p10 = pneg %p768_p8  ;;  %s44_s25 = ssub.s32 %s706_s12, %s778_s23 }
   0xf   : > { %p45_p12 = scmp.eq.s32.totalorder %s44_s25, 0  ;;  %p54_p13 = scmp.ne.s32.totalorder %s702_s11, %s698_s10 }
  0x10   : > { %p527_p11 = pnand %p526_p10, %p61_p1  ;;  %p55_p0 = scmp.eq.s32.totalorder %s706_s12, 0 }
  0x11   : > { %s787_s26 = scalar_select %p45_p12, %s702_s11, %s47_s24  }
  0x12   : > { %529 = dma.hbm_to_vmem [thread:$0]  (!%p527_p11), %s110_s19, 64, %s112_s22, [#allocation3]  }
  0x13   : > { %p791_p3 = por %p84_p2, %p54_p13  ;;  %p539_p5 = scmp.lt.s32.totalorder %s706_s12, 2 }
  0x14   : > { %s122_s28 = sand.u32 1, %s702_s11   ;;  %s443_s29 = sshll.u32 %s706_s12, 1 }
  0x15   : > { %p56_p7 = por %p55_p0, %p54_p13  ;;  %s442_s30 = sshll.u32 %s122_s28, 1 }
  0x16   : > { %s130_s5 = scalar_lea.hbm %s936_s1, %s443_s29  ;;  %s126_s7 = scalar_lea.vmem [#allocation5], %s442_s30 }
  0x17   : > { %s132_s6 = sshll.u32 %s130_s5, 4  ;;  %s134_s8 = sshll.u32 %s126_s7, 4  ;;  %s133_s6 = int_to_ptr.hbm [resolvable:$true] %s132_s6  ;;  %s135_s8 = int_to_ptr.vmem [resolvable:$true] %s134_s8 }
  0x18   : > { %p801_p10 = pnand %p539_p5, %p56_p7  ;;  %s123_s17 = scalar_lea.sflag [#allocation6], %s122_s28 }
  0x19   : > { %s606_s18 = sshra.s32 %s133_s6, 4  ;;  %s613_s24 = scalar_lea.hbm %s936_s1, 4  ;;  %s607_s18 = int_to_ptr.hbm [resolvable:$true] %s606_s18 }
  0x1a   : > { %s608_s19 = scalar_lea.hbm %s607_s18, 2  ;;  %p610_p11 = pneg %p801_p10 }
  0x1b   : > { %p609_p2 = scmp.ne.s32.totalorder %s607_s18, %s608_s19  ;;  %p614_p0 = scmp.lt.s32.totalorder %s607_s18, %s936_s1 }
  0x1c   : > { %p615_p5 = scmp.lt.s32.totalorder %s613_s24, %s608_s19 }
  0x1d   : > { %p611_p12 = pnand %p610_p11, %p609_p2 }
  0x1e   : > { %p616_p7 = por %p615_p5, %p614_p0 }
  0x1f   : > { %p612_p13 = pneg %p611_p12 }
  0x21   : > { %p617_p9 = pnand %p616_p7, %p612_p13 }
  0x23   : > { %620 = shalt.err (!%p617_p9)
}
  0x24   : > { %533 = dma.hbm_to_vmem [thread:$0]  (!%p801_p10), %s133_s6, 32, %s135_s8, %s123_s17  }
  0x25   : > { %143 = sbr.rel (%p768_p8) target bundleno = 221 (0xdd), region = 28 }
  0x2a   : > { %681 = dma.done.wait (%p61_p1), [#allocation3], 64  }
  0x2b   : > { %683 = vsyncadd (%p61_p1), [#allocation3], 4294967232  ;;  %s822_s28 = sand.u32 1, %s698_s10  }
  0x2c   : > { %s446_s30 = sshll.u32 %s822_s28, 1  ;;  %s151_s3 = scalar_lea.sflag [#allocation6], %s822_s28 }
  0x2d   : > { %s154_s4 = scalar_lea.vmem [#allocation5], %s446_s30 }
  0x2e   : > { %685 = dma.done.wait (%p755_p4), %s151_s3, 32  }
  0x2f   : > { %687 = vsyncadd (%p755_p4), %s151_s3, 4294967264  ;;  %v178_v0 = vlaneseq  ;;  %v195_v4 = vld [vmem:[%s154_s4] sm:$0x3]  ;;  %v709_v11 = vmov 1.0|1.0   ;;  %s517_s15 = sshll.u32 %s746_s13, 4 }
  0x30   : > { %v836_v7 = vperm.slane %v195_v4, 0  ;;  %v838_v8 = vperm.slane %v195_v4, 1  ;;  %v310_v21 = vld [vmem:[#allocation2] sm:$0xf]  ;;  %s447_s20 = sshll.u32 %s822_s28, 4  ;;  %s351_s7 = scalar_lea.hbm %s937_s2, %s517_s15 }
  0x31   : > { %v830_v1 = vshrl.u32 %v178_v0, 7  ;;  %s175_s8 = scalar_lea.vmem [#allocation7], %s447_s20  ;;  %s355_s17 = sshll.u32 %s351_s7, 4  ;;  %s356_s17 = int_to_ptr.hbm [resolvable:$true] %s355_s17 }
  0x32   : > { %s353_s14 = sshll.u32 %s175_s8, 4  ;;  %s340_s18 = scalar_lea.sflag [#allocation4], %s822_s28  ;;  %s354_s14 = int_to_ptr.vmem [resolvable:$true] %s353_s14 }
  0x33   : > { %v193_v2 = vadd.s32 112, %v830_v1  ;;  %v194_v3 = vadd.s32 120, %v830_v1  ;;  %v191_v5 = vadd.s32 96, %v830_v1  ;;  %v192_v6 = vadd.s32 104, %v830_v1  ;;  %s650_s19 = sshra.s32 %s356_s17, 4  ;;  %s656_s24 = scalar_lea.hbm %s937_s2, 32  ;;  %s651_s19 = int_to_ptr.hbm [resolvable:$true] %s650_s19 }
  0x34   : > { %v189_v9 = vadd.s32 80, %v830_v1  ;;  %v190_v10 = vadd.s32 88, %v830_v1  ;;  %v187_v12 = vadd.s32 64, %v830_v1  ;;  %v188_v13 = vadd.s32 72, %v830_v1  ;;  %s652_s21 = scalar_lea.hbm %s651_s19, 16  ;;  %p657_p9 = scmp.lt.s32.totalorder %s651_s19, %s937_s2 }
  0x35   : > { %vm226_vm0 = vcmp.eq.s32.totalorder %v836_v7, %v193_v2  ;;  %vm228_vm1 = vcmp.eq.s32.totalorder %v836_v7, %v194_v3  ;;  %vm227_vm2 = vcmp.eq.s32.totalorder %v838_v8, %v193_v2  ;;  %vm229_vm3 = vcmp.eq.s32.totalorder %v838_v8, %v194_v3  ;;  %p653_p1 = scmp.ne.s32.totalorder %s651_s19, %s652_s21  ;;  %p658_p10 = scmp.lt.s32.totalorder %s656_s24, %s652_s21 }
  0x36   : > { %vm480_vm4 = vmpackc.low %vm228_vm1, %vm226_vm0  ;;  %vm222_vm5 = vcmp.eq.s32.totalorder %v836_v7, %v191_v5  ;;  %vm224_vm6 = vcmp.eq.s32.totalorder %v836_v7, %v192_v6  ;;  %vm223_vm7 = vcmp.eq.s32.totalorder %v838_v8, %v191_v5  ;;  %vm225_vm8 = vcmp.eq.s32.totalorder %v838_v8, %v192_v6 }
  0x37   : > { %481 = vmatpush.bf16.msk.msra.mxu0 %vm480_vm4, %v709_v11  ;;  %vm496_vm9 = vmpackc.low %vm229_vm3, %vm227_vm2  ;;  %vm218_vm12 = vcmp.eq.s32.totalorder %v836_v7, %v189_v9  ;;  %vm220_vm13 = vcmp.eq.s32.totalorder %v836_v7, %v190_v10  ;;  %vm219_vm14 = vcmp.eq.s32.totalorder %v838_v8, %v189_v9  ;;  %vm221_vm15 = vcmp.eq.s32.totalorder %v838_v8, %v190_v10  ;;  %p654_p4 = pnand %p653_p1, %p791_p3  ;;  %p659_p2 = por %p658_p10, %p657_p9 }
  0x38   : > { %497 = vmatpush.bf16.msk.msra.mxu1 %vm496_vm9, %v709_v11  ;;  %vm482_vm10 = vmpackc.low %vm224_vm6, %vm222_vm5  ;;  %vm214_vm2 = vcmp.eq.s32.totalorder %v836_v7, %v187_v12  ;;  %vm216_vm3 = vcmp.eq.s32.totalorder %v836_v7, %v188_v13  ;;  %v185_v14 = vadd.s32 48, %v830_v1  ;;  %v186_v15 = vadd.s32 56, %v830_v1 }
  0x39   : > { %vm498_vm11 = vmpackc.low %vm225_vm8, %vm223_vm7  ;;  %vm215_vm4 = vcmp.eq.s32.totalorder %v838_v8, %v187_v12  ;;  %vm217_vm5 = vcmp.eq.s32.totalorder %v838_v8, %v188_v13  ;;  %v183_v16 = vadd.s32 32, %v830_v1  ;;  %v184_v17 = vadd.s32 40, %v830_v1  ;;  %p655_p8 = pneg %p654_p4 }
  0x3a   : > { %vm484_vm0 = vmpackc.low %vm220_vm13, %vm218_vm12  ;;  %vm210_vm8 = vcmp.eq.s32.totalorder %v836_v7, %v185_v14  ;;  %vm212_vm9 = vcmp.eq.s32.totalorder %v836_v7, %v186_v15  ;;  %v181_v18 = vadd.s32 16, %v830_v1  ;;  %v182_v19 = vadd.s32 24, %v830_v1 }
  0x3b   : > { %483 = vmatpush.bf16.msk.msra.mxu0 %vm482_vm10, %v709_v11  ;;  %vm500_vm1 = vmpackc.low %vm221_vm15, %vm219_vm14  ;;  %vm211_vm10 = vcmp.eq.s32.totalorder %v838_v8, %v185_v14  ;;  %vm206_vm14 = vcmp.eq.s32.totalorder %v836_v7, %v183_v16  ;;  %vm208_vm15 = vcmp.eq.s32.totalorder %v836_v7, %v184_v17  ;;  %v180_v20 = vadd.s32 8, %v830_v1  ;;  %p660_p11 = pnand %p659_p2, %p655_p8 }
  0x3c   : > { %499 = vmatpush.bf16.msk.msra.mxu1 %vm498_vm11, %v709_v11  ;;  %vm486_vm6 = vmpackc.low %vm216_vm3, %vm214_vm2  ;;  %vm213_vm11 = vcmp.eq.s32.totalorder %v838_v8, %v186_v15 }
  0x3d   : > { %vm502_vm7 = vmpackc.low %vm217_vm5, %vm215_vm4  ;;  %vm202_vm4 = vcmp.eq.s32.totalorder %v836_v7, %v181_v18  ;;  %vm204_vm5 = vcmp.eq.s32.totalorder %v836_v7, %v182_v19 }
  0x3e   : > { %vm488_vm12 = vmpackc.low %vm212_vm9, %vm210_vm8 }
  0x3f   : > { %485 = vmatpush.bf16.msk.msra.mxu0 %vm484_vm0, %v709_v11  ;;  %vm504_vm13 = vmpackc.low %vm213_vm11, %vm211_vm10  ;;  %vm207_vm0 = vcmp.eq.s32.totalorder %v838_v8, %v183_v16  ;;  %vm198_vm10 = vcmp.eq.s32.totalorder %v836_v7, %v830_v1  ;;  %vm200_vm11 = vcmp.eq.s32.totalorder %v836_v7, %v180_v20 }
  0x40   : > { %501 = vmatpush.bf16.msk.msra.mxu1 %vm500_vm1, %v709_v11  ;;  %vm209_vm1 = vcmp.eq.s32.totalorder %v838_v8, %v184_v17  ;;  %vm490_vm2 = vmpackc.low %vm208_vm15, %vm206_vm14 }
  0x41   : > { %vm506_vm3 = vmpackc.low %vm209_vm1, %vm207_vm0 }
  0x42   : > { %vm492_vm8 = vmpackc.low %vm204_vm5, %vm202_vm4 }
  0x43   : > { %487 = vmatpush.bf16.msk.msra.mxu0 %vm486_vm6, %v709_v11  ;;  %vm203_vm6 = vcmp.eq.s32.totalorder %v838_v8, %v181_v18  ;;  %vm494_vm14 = vmpackc.low %vm200_vm11, %vm198_vm10 }
  0x44   : > { %503 = vmatpush.bf16.msk.msra.mxu1 %vm502_vm7, %v709_v11  ;;  %vm205_vm7 = vcmp.eq.s32.totalorder %v838_v8, %v182_v19 }
  0x45   : > { %vm508_vm9 = vmpackc.low %vm205_vm7, %vm203_vm6 }
  0x47   : > { %489 = vmatpush.bf16.msk.msra.mxu0 %vm488_vm12, %v709_v11  ;;  %vm199_vm12 = vcmp.eq.s32.totalorder %v838_v8, %v830_v1 }
  0x48   : > { %505 = vmatpush.bf16.msk.msra.mxu1 %vm504_vm13, %v709_v11  ;;  %vm201_vm13 = vcmp.eq.s32.totalorder %v838_v8, %v180_v20 }
  0x49   : > { %vm510_vm15 = vmpackc.low %vm201_vm13, %vm199_vm12 }
  0x4b   : > { %491 = vmatpush.bf16.msk.msra.mxu0 %vm490_vm2, %v709_v11 }
  0x4c   : > { %507 = vmatpush.bf16.msk.msra.mxu1 %vm506_vm3, %v709_v11 }
  0x4f   : > { %493 = vmatpush.bf16.msk.msra.mxu0 %vm492_vm8, %v709_v11 }
  0x50   : > { %509 = vmatpush.bf16.msk.msra.mxu1 %vm508_vm9, %v709_v11 }
  0x53   : > { %495 = vmatpush.bf16.msk.msra.mxu0 %vm494_vm14, %v709_v11 }
  0x54   : > { %511 = vmatpush.bf16.msk.msra.mxu1 %vm510_vm15, %v709_v11 }
  0x56   : > { %319 = vmatmul.bf16.vlgmr.msra.gmra.mxu0 %v310_v21 }
  0x57   : > { %332 = vmatmul.bf16.vlgmr.msra.gmra.mxu1 %v310_v21 }
  0xd3   : > { %v320_v22 = vpop.f32.mrf.mxu0 }
  0xd4   : > { %337 = vst [vmem:[%s175_s8] sm:$0xff] %v320_v22  ;;  %v333_v23 = vpop.f32.mrf.mxu1 }
  0xd5   : > { %338 = vst [vmem:[%s175_s8 + $0x8] sm:$0xff] %v333_v23 }
  0xd6   : > { %663 = shalt.err (!%p660_p11)
}
  0xd7   : > { %524 = dma.vmem_to_hbm [thread:$0]  (%p791_p3), %s354_s14, 256, %s356_s17, %s340_s18  }
  0xdb   : > { %v322_v24 = vpop.f32.mrf.mxu0 }
  0xdc   : > { %v335_v25 = vpop.f32.mrf.mxu1 }
  0xdd PF: > { %s367_s28 = sand.u32 1, %s694_s9   ;;  %p943_p12 = scmp.ge.s32.totalorder %s706_s12, 2 }
  0xde   : > { %s368_s30 = scalar_lea.sflag [#allocation4], %s367_s28 }
  0xdf   : > { %p535_p13 = pnand %p943_p12, %p760_p6 }
  0xe1   : > { %p536_p0 = pneg %p535_p13 }
  0xe3   : > { %689 = dma.done.wait (%p536_p0), %s368_s30, 256  }
  0xe4   : > { %691 = vsyncadd (%p536_p0), %s368_s30, 4294967040  ;;  %p16_p3 = scmp.ge.s32.totalorder %s778_s23, 4   ;;  %s944_s9 = smov %s698_s10 }
  0xe5   : > { %s945_s10 = smov %s702_s11  ;;  %s946_s11 = smov %s787_s26 }
  0xe6   : > { %s947_s12 = smov %s778_s23  ;;  %18 = sbr.rel (!%p16_p3) target bundleno = 6 (0x6), region = 78 }
  0xeb   :  { %374 = vsyncpa [#allocation3], 1 }
  0xec   :  { %376 = vsyncpa [#allocation3 + $0x1], 1 }
  0xed   :  { %377 = vsyncpa [#allocation6], 1 }
  0xee   :  { %379 = vsyncpa [#allocation6 + $0x1], 1 }
  0xef   :  { %380 = vsyncpa [#allocation4], 1 }
  0xf0   :  { %382 = vsyncpa [#allocation4 + $0x1], 1 }

</bundles_post_ra>
